<compile_context>
chip_gen: v7x
topology: tpu7x:2x2x1
jax: 0.10.0
libtpu: 0.0.40
codegen_flags: <defaults>
</compile_context>

<pallas_src>
import functools

import jax
import jax.numpy as jnp
from jax.experimental import pallas as pl
from jax.experimental.pallas import tpu as pltpu


NCLS = 7
LANE = 128
F_PAD = 128      # encoder feature width padded to a full lane (32 -> 128)
NCLS_PAD = 128   # head output padded to a full lane (7 -> 128), sliced in wrapper


def _round_up(x, m):
    return ((x + m - 1) // m) * m


# -----------------------------------------------------------------------------
# Fused kernel: one grid step == one tile of B_TILE batch elements.
#   conv-as-matmul (bf16 operands, f32 acc) -> bias + ReLU -> GAP (sum)
#   -> head matmul (bf16 operands, f32 acc; 1/HW pre-folded into weights)
# -----------------------------------------------------------------------------
def fused_encoder_head_kernel(p_ref, wc_ref, bc_ref, wh_ref, bh_ref, o_ref,
                              *, b_tile, hw):
    # p_ref : (B_TILE, HW, K_PAD)   bf16  im2col patches of this batch tile
    # wc_ref: (K_PAD, F_PAD)        bf16  conv weights (zero-padded)
    # bc_ref: (1, F_PAD)            f32   conv bias    (zero-padded)
    # wh_ref: (F_PAD, NCLS_PAD)     bf16  head weights * (1/HW) (zero-padded)
    # bh_ref: (1, NCLS_PAD)         f32   head bias    (zero-padded)
    # o_ref : (B_TILE, NCLS_PAD)    f32   logits rows (lane-dense store)
    k_pad = p_ref.shape[-1]

    # One big conv matmul over all batch elements of this tile (MXU, f32 acc).
    p2d = p_ref[...].reshape(b_tile * hw, k_pad)                   # (B*HW, K_PAD)
    z = jnp.dot(p2d, wc_ref[...], preferred_element_type=jnp.float32)
    z = jnp.maximum(z + bc_ref[...], 0.0)                          # (B*HW, F_PAD)

    # Global average pool as a plain per-element sum (1/HW folded into wh).
    pooled = jnp.sum(z.reshape(b_tile, hw, F_PAD), axis=1)         # (B_TILE, F_PAD)

    # Batched 7-way head (padded to 128 lanes); unmasked full-lane store.
    logits = jnp.dot(pooled.astype(jnp.bfloat16), wh_ref[...],
                     preferred_element_type=jnp.float32) + bh_ref[...]
    o_ref[...] = logits.astype(o_ref.dtype)


# -----------------------------------------------------------------------------
# Glue: im2col patch extraction (3x3, stride 1, pad 1) in plain JAX.
# Flattening order along K is (dh, dw, c).
# -----------------------------------------------------------------------------
def im2col_3x3(x_nhwc):
    B, H, W, C = x_nhwc.shape
    xp = jnp.pad(x_nhwc, ((0, 0), (1, 1), (1, 1), (0, 0)))
    cols = [xp[:, dh:dh + H, dw:dw + W, :] for dh in range(3) for dw in range(3)]
    patches = jnp.concatenate(cols, axis=-1)          # (B, H, W, 9*C)
    return patches.reshape(B, H * W, 9 * C)           # (B, HW, K)


# -----------------------------------------------------------------------------
# Full forward: NCHW input -> 7-class logits (matches Network_test.forward).
# -----------------------------------------------------------------------------
def network_test_forward(x_nchw, params):
    w_conv, b_conv, w_head, b_head = params   # (K,F) (1,F) (F,7) (1,7), all f32
    B, C, H, W = x_nchw.shape
    HW = H * W
    K = 9 * C
    F = w_conv.shape[1]
    K_PAD = _round_up(K, LANE)                # lane-dense contraction (27 -> 128)

    # Batch tiling: small batches collapse to a single fat grid step; larger
    # batches use 8-row tiles (sublane-aligned) on a "parallel" grid axis.
    if B <= 8:
        B_TILE, B_PAD = B, B
    else:
        B_TILE, B_PAD = 8, _round_up(B, 8)
    n_steps = B_PAD // B_TILE

    x_nhwc = jnp.transpose(x_nchw, (0, 2, 3, 1))                  # NCHW -> NHWC
    patches = im2col_3x3(x_nhwc)                                  # (B, HW, K)
    patches = jnp.pad(patches, ((0, B_PAD - B), (0, 0), (0, K_PAD - K)))
    patches = patches.astype(jnp.bfloat16)                        # bf16 MXU operand

    wc = jnp.pad(w_conv, ((0, K_PAD - K), (0, F_PAD - F))).astype(jnp.bfloat16)
    bc = jnp.pad(b_conv, ((0, 0), (0, F_PAD - F)))
    # Fold the 1/HW GAP scale into the head weights -> kernel GAP is a plain sum.
    wh = jnp.pad(w_head * (1.0 / HW),
                 ((0, F_PAD - F), (0, NCLS_PAD - NCLS))).astype(jnp.bfloat16)
    bh = jnp.pad(b_head, ((0, 0), (0, NCLS_PAD - NCLS)))

    cost = pl.CostEstimate(
        flops=2 * B_PAD * HW * K_PAD * F_PAD + 2 * B_PAD * F_PAD * NCLS_PAD,
        transcendentals=0,
        bytes_accessed=(patches.size * 2 + wc.size * 2 + bc.size * 4
                        + wh.size * 2 + bh.size * 4 + B_PAD * NCLS_PAD * 4),
    )

    kernel = functools.partial(fused_encoder_head_kernel, b_tile=B_TILE, hw=HW)

    out = pl.pallas_call(
        kernel,
        out_shape=jax.ShapeDtypeStruct((B_PAD, NCLS_PAD), jnp.float32),
        grid_spec=pltpu.PrefetchScalarGridSpec(
            num_scalar_prefetch=0,
            grid=(n_steps,),
            in_specs=[
                pl.BlockSpec((B_TILE, HW, K_PAD), lambda b: (b, 0, 0)),
                pl.BlockSpec((K_PAD, F_PAD), lambda b: (0, 0)),
                pl.BlockSpec((1, F_PAD), lambda b: (0, 0)),
                pl.BlockSpec((F_PAD, NCLS_PAD), lambda b: (0, 0)),
                pl.BlockSpec((1, NCLS_PAD), lambda b: (0, 0)),
            ],
            out_specs=pl.BlockSpec((B_TILE, NCLS_PAD), lambda b: (b, 0)),
        ),
        compiler_params=pltpu.CompilerParams(
            dimension_semantics=("parallel",)),
        cost_estimate=cost,
    )(patches, wc, bc, wh, bh)

    return out[:B, :NCLS]                                         # (B, 7)


def network_test_reference(x_nchw, params):
    """Pure-JAX f32 reference for correctness checking."""
    w_conv, b_conv, w_head, b_head = params
    x_nhwc = jnp.transpose(x_nchw, (0, 2, 3, 1))
    patches = im2col_3x3(x_nhwc)                                  # (B, HW, K)
    feats = jnp.maximum(jnp.einsum("bmk,kf->bmf", patches, w_conv) + b_conv[0], 0.0)
    pooled = feats.mean(axis=1)                                   # (B, F)
    return pooled @ w_head + b_head[0]                            # (B, 7)


if __name__ == "__main__":
    # Small deterministic setup: batch=2, channels=3, spatial=16x16,
    # encoder width num_head=32, 7 output classes.
    B, C, H, W = 2, 3, 16, 16
    F = 32

    key = jax.random.PRNGKey(0)
    k_x, k_wc, k_bc, k_wh, k_bh = jax.random.split(key, 5)

    x = jax.random.normal(k_x, (B, C, H, W), dtype=jnp.float32)
    w_conv = jax.random.normal(k_wc, (9 * C, F), dtype=jnp.float32) * 0.05
    b_conv = jax.random.normal(k_bc, (1, F), dtype=jnp.float32) * 0.01
    w_head = jax.random.normal(k_wh, (F, NCLS), dtype=jnp.float32) * 0.05
    b_head = jax.random.normal(k_bh, (1, NCLS), dtype=jnp.float32) * 0.01
    params = (w_conv, b_conv, w_head, b_head)

    out = jax.block_until_ready(network_test_forward(x, params))
    assert out.shape == (B, NCLS), out.shape

    ref = network_test_reference(x, params)
    # bf16 MXU operands with f32 accumulation -> widened tolerance vs f32 ref.
    assert jnp.allclose(out, ref, atol=2e-2, rtol=2e-2), ("mismatch", out, ref)

    print("KERNEL_OK")
</pallas_src>

<mosaic_0001>
module attributes {stable_mosaic.version = 11 : i64} {
  func.func @fused_encoder_head_kernel(%arg0: i32, %arg1: memref<2x256x128xbf16, #tpu.memory_space<vmem>>, %arg2: memref<128x128xbf16, #tpu.memory_space<vmem>>, %arg3: memref<1x128xf32, #tpu.memory_space<vmem>>, %arg4: memref<128x128xbf16, #tpu.memory_space<vmem>>, %arg5: memref<1x128xf32, #tpu.memory_space<vmem>>, %arg6: memref<2x128xf32, #tpu.memory_space<vmem>>) attributes {dimension_semantics = [#tpu.dimension_semantics<parallel>], iteration_bounds = array<i64: 1>, scalar_prefetch = 0 : i64, scratch_operands = 0 : i64, tpu.core_type = #tpu.core_type<tc>, window_params = [{transform_indices = @transform_0, window_bounds = array<i64: 2, 256, 128>}, {pipeline_mode = #tpu.pipeline_mode<synchronous>, transform_indices = @transform_1, window_bounds = array<i64: 128, 128>}, {pipeline_mode = #tpu.pipeline_mode<synchronous>, transform_indices = @transform_2, window_bounds = array<i64: 1, 128>}, {pipeline_mode = #tpu.pipeline_mode<synchronous>, transform_indices = @transform_3, window_bounds = array<i64: 128, 128>}, {pipeline_mode = #tpu.pipeline_mode<synchronous>, transform_indices = @transform_4, window_bounds = array<i64: 1, 128>}, {transform_indices = @transform_5, window_bounds = array<i64: 2, 128>}]} {
    %c0 = arith.constant 0 : index
    %c0_0 = arith.constant 0 : index
    %c0_1 = arith.constant 0 : index
    %0 = vector.load %arg1[%c0, %c0_0, %c0_1] : memref<2x256x128xbf16, #tpu.memory_space<vmem>>, vector<2x256x128xbf16>
    %1 = vector.shape_cast %0 : vector<2x256x128xbf16> to vector<512x128xbf16>
    %c0_2 = arith.constant 0 : index
    %c0_3 = arith.constant 0 : index
    %2 = vector.load %arg2[%c0_2, %c0_3] : memref<128x128xbf16, #tpu.memory_space<vmem>>, vector<128x128xbf16>
    %cst = arith.constant dense<0.000000e+00> : vector<512x128xf32>
    %3 = tpu.matmul %1, %2, %cst {dimension_numbers = #tpu.dot_dimension_numbers<[1], [0], [0], [1], [0, 0, 1, 1], [], []>} : vector<512x128xbf16>, vector<128x128xbf16>, vector<512x128xf32> -> vector<512x128xf32>
    %c0_4 = arith.constant 0 : index
    %c0_5 = arith.constant 0 : index
    %4 = vector.load %arg3[%c0_4, %c0_5] : memref<1x128xf32, #tpu.memory_space<vmem>>, vector<1x128xf32>
    %5 = vector.broadcast %4 : vector<1x128xf32> to vector<512x128xf32>
    %6 = arith.addf %3, %5 : vector<512x128xf32>
    %cst_6 = arith.constant 0.000000e+00 : f32
    %7 = vector.broadcast %cst_6 : f32 to vector<512x128xf32>
    %8 = arith.maximumf %6, %7 : vector<512x128xf32>
    %9 = vector.shape_cast %8 : vector<512x128xf32> to vector<2x256x128xf32>
    %cst_7 = arith.constant dense<0.000000e+00> : vector<2x128xf32>
    %10 = vector.multi_reduction <add>, %9, %cst_7 [1] : vector<2x256x128xf32> to vector<2x128xf32>
    %11 = arith.truncf %10 : vector<2x128xf32> to vector<2x128xbf16>
    %c0_8 = arith.constant 0 : index
    %c0_9 = arith.constant 0 : index
    %12 = vector.load %arg4[%c0_8, %c0_9] : memref<128x128xbf16, #tpu.memory_space<vmem>>, vector<128x128xbf16>
    %cst_10 = arith.constant dense<0.000000e+00> : vector<2x128xf32>
    %13 = tpu.matmul %11, %12, %cst_10 {dimension_numbers = #tpu.dot_dimension_numbers<[1], [0], [0], [1], [0, 0, 1, 1], [], []>} : vector<2x128xbf16>, vector<128x128xbf16>, vector<2x128xf32> -> vector<2x128xf32>
    %c0_11 = arith.constant 0 : index
    %c0_12 = arith.constant 0 : index
    %14 = vector.load %arg5[%c0_11, %c0_12] : memref<1x128xf32, #tpu.memory_space<vmem>>, vector<1x128xf32>
    %15 = vector.broadcast %14 : vector<1x128xf32> to vector<2x128xf32>
    %16 = arith.addf %13, %15 : vector<2x128xf32>
    %c0_13 = arith.constant 0 : index
    %c0_14 = arith.constant 0 : index
    %17 = vector.load %arg6[%c0_13, %c0_14] : memref<2x128xf32, #tpu.memory_space<vmem>>, vector<2x128xf32>
    tpu.vector_store %arg6[%c0_13, %c0_14], %16 {strides = array<i32>} : memref<2x128xf32, #tpu.memory_space<vmem>>, vector<2x128xf32>,
    return
  }
  func.func @transform_0(%arg0: i32) -> (i32, i32, i32) {
    %c0_i32 = arith.constant 0 : i32
    %c0_i32_0 = arith.constant 0 : i32
    %c0_i32_1 = arith.constant 0 : i32
    return %arg0, %c0_i32, %c0_i32_0 : i32, i32, i32
  }
  func.func @transform_1(%arg0: i32) -> (i32, i32) {
    %c0_i32 = arith.constant 0 : i32
    %c0_i32_0 = arith.constant 0 : i32
    %c0_i32_1 = arith.constant 0 : i32
    return %c0_i32, %c0_i32_0 : i32, i32
  }
  func.func @transform_2(%arg0: i32) -> (i32, i32) {
    %c0_i32 = arith.constant 0 : i32
    %c0_i32_0 = arith.constant 0 : i32
    %c0_i32_1 = arith.constant 0 : i32
    return %c0_i32, %c0_i32_0 : i32, i32
  }
  func.func @transform_3(%arg0: i32) -> (i32, i32) {
    %c0_i32 = arith.constant 0 : i32
    %c0_i32_0 = arith.constant 0 : i32
    %c0_i32_1 = arith.constant 0 : i32
    return %c0_i32, %c0_i32_0 : i32, i32
  }
  func.func @transform_4(%arg0: i32) -> (i32, i32) {
    %c0_i32 = arith.constant 0 : i32
    %c0_i32_0 = arith.constant 0 : i32
    %c0_i32_1 = arith.constant 0 : i32
    return %c0_i32, %c0_i32_0 : i32, i32
  }
  func.func @transform_5(%arg0: i32) -> (i32, i32) {
    %c0_i32 = arith.constant 0 : i32
    %c0_i32_0 = arith.constant 0 : i32
    return %arg0, %c0_i32 : i32, i32
  }
}

</mosaic_0001>

<bundles_post_ra>
// kernel: tpu_custom_call.1
= control target key start
LH: loop header
LB: loop body
LE: loop exit
PB: predicated region body
PF: predicated region fallthrough
CT: control target
= control target key end

     0   :  { %10 = vsyncpa [#allocation3], 0  ;;  %s1591_s0 = inlined_call_operand.hbm [shape: bf16[2,256,128], index: 0, kind: input, shape index: {}]   ;;  %s1592_s1 = inlined_call_operand.hbm [shape: bf16[128,128], index: 1, kind: input, shape index: {}]   ;;  %s1593_s2 = inlined_call_operand.vmem [shape: f32[1,128], index: 2, kind: input, shape index: {}]   ;;  %s1594_s3 = inlined_call_operand.hbm [shape: bf16[128,128], index: 3, kind: input, shape index: {}]   ;;  %s1595_s4 = inlined_call_operand.vmem [shape: f32[1,128], index: 4, kind: input, shape index: {}]   ;;  %s1596_s5 = inlined_call_operand.hbm [shape: f32[2,128], index: 5, kind: output, shape index: {}]  }
   0x1   :  { %11 = vsyncpa [#allocation6], 0 }
   0x2   :  { %12 = vsyncpa [#allocation4], 0  ;;  %s1320_s18 = smov [#allocation5]   ;;  %s1321_s20 = smov [#allocation2]  }
   0x3   :  { %s30_s19 = sshll.u32 %s1320_s18, 4  ;;  %s18_s21 = sshll.u32 %s1321_s20, 4  ;;  %s31_s19 = int_to_ptr.vmem [resolvable:$true] %s30_s19  ;;  %s1358_s21 = int_to_ptr.vmem [resolvable:$true] %s18_s21 }
   0x4   :  { %s1226_s24 = scalar_lea.hbm %s1592_s1, 1024 }
   0x5   :  { %p1227_p0 = scmp.ne.s32.totalorder %s1592_s1, %s1226_s24  ;;  %p1230_p1 = scmp.lt.u32.totalorder %s1226_s24, %s1592_s1 }
   0x7   :  { %p1232_p2 = pnand %p1230_p1, %p1227_p0 }
   0x9   :  { %1235 = shalt.err (!%p1232_p2)
}
   0xa   :  { %s1236_s29 = scalar_lea.vmem %s31_s19, 1024  ;;  %p1241_p4 = scmp.lt.s32.totalorder %s31_s19, %s31_s19 }
   0xb   :  { %p1237_p3 = scmp.ne.s32.totalorder %s31_s19, %s1236_s29  ;;  %p1242_p5 = scmp.lt.s32.totalorder %s1236_s29, %s1236_s29 }
   0xd   :  { %p1243_p6 = por %p1242_p5, %p1241_p4 }
   0xf   :  { %p1244_p7 = pnand %p1243_p6, %p1237_p3 }
  0x11   :  { %1247 = shalt.err (!%p1244_p7)
}
  0x12   :  { %s1322_s30 = smov 64   ;;  %s1323_s6 = smov 4  }
  0x13   :  { %36 = dma.hbm_to_vmem [thread:$0]  %s1592_s1, 1024, %s31_s19, [#allocation6], %s1322_s30, %s1322_s30, %s1323_s6  }
  0x14   :  { %s1248_s11 = scalar_lea.hbm %s1591_s0, 4096 }
  0x15   :  { %p1249_p8 = scmp.ne.s32.totalorder %s1591_s0, %s1248_s11  ;;  %p1252_p9 = scmp.lt.u32.totalorder %s1248_s11, %s1591_s0 }
  0x17   :  { %p1254_p10 = pnand %p1252_p9, %p1249_p8 }
  0x19   :  { %1257 = shalt.err (!%p1254_p10)
}
  0x1a   :  { %s1258_s16 = scalar_lea.vmem %s1358_s21, 4096  ;;  %p1263_p12 = scmp.lt.s32.totalorder %s1358_s21, %s1358_s21 }
  0x1b   :  { %p1259_p11 = scmp.ne.s32.totalorder %s1358_s21, %s1258_s16  ;;  %p1264_p13 = scmp.lt.s32.totalorder %s1258_s16, %s1258_s16 }
  0x1d   :  { %p1265_p0 = por %p1264_p13, %p1263_p12 }
  0x1f   :  { %p1266_p1 = pnand %p1265_p0, %p1259_p11 }
  0x21   :  { %1269 = shalt.err (!%p1266_p1)
}
  0x22   :  { %24 = dma.hbm_to_vmem [thread:$0]  %s1591_s0, 4096, %s1358_s21, [#allocation3], %s1322_s30, %s1322_s30, %s1323_s6  }
  0x23   :  { %s1324_s18 = smov [#allocation7]   ;;  %s1270_s23 = scalar_lea.hbm %s1594_s3, 1024 }
  0x24   :  { %s44_s19 = sshll.u32 %s1324_s18, 4  ;;  %p1271_p2 = scmp.ne.s32.totalorder %s1594_s3, %s1270_s23  ;;  %s45_s19 = int_to_ptr.vmem [resolvable:$true] %s44_s19 }
  0x25   :  { %p1274_p3 = scmp.lt.u32.totalorder %s1270_s23, %s1594_s3 }
  0x27   :  { %p1276_p4 = pnand %p1274_p3, %p1271_p2 }
  0x29   :  { %1279 = shalt.err (!%p1276_p4)
}
  0x2a   :  { %s1280_s28 = scalar_lea.vmem %s45_s19, 1024  ;;  %p1285_p6 = scmp.lt.s32.totalorder %s45_s19, %s45_s19 }
  0x2b   :  { %p1281_p5 = scmp.ne.s32.totalorder %s45_s19, %s1280_s28  ;;  %p1286_p7 = scmp.lt.s32.totalorder %s1280_s28, %s1280_s28 }
  0x2d   :  { %p1287_p8 = por %p1286_p7, %p1285_p6 }
  0x2f   :  { %p1288_p9 = pnand %p1287_p8, %p1281_p5 }
  0x31   :  { %1291 = shalt.err (!%p1288_p9)
}
  0x32   :  { %50 = dma.hbm_to_vmem [thread:$0]  %s1594_s3, 1024, %s45_s19, [#allocation6], %s1322_s30, %s1322_s30, %s1323_s6  }
  0x33   :  { %1314 = dma.done.wait [#allocation3], 4096  }
  0x34   :  { %1315 = vsyncadd [#allocation3], 4294963200 }
  0x35   :  { %1316 = dma.done.wait [#allocation6], 2048  }
  0x36   :  { %1317 = vsyncadd [#allocation6], 4294965248  ;;  %v1178_v0 = vld [vmem:[#allocation5] sm:$0xff]   ;;  %v1179_v1 = vld [vmem:[#allocation5 + $0x8] sm:$0xff]   ;;  %v1325_v41 = vmov 0.0   ;;  %vm1326_vm0 = vmmov 0  }
  0x37   :  { %1054 = vmatprep.subr.bf16.mxu0 %v1178_v0  ;;  %1154 = vmatprep.subr.bf16.mxu1 %v1178_v0  ;;  %v1180_v2 = vld [vmem:[#allocation5 + $0x10] sm:$0xff]   ;;  %v1181_v3 = vld [vmem:[#allocation5 + $0x18] sm:$0xff]   ;;  %v1186_v4 = vld [vmem:[#allocation2] sm:$0xff]   ;;  %vm846_vm1 = vcmask 1041409   ;;  %s1327_s6 = smov [#allocation8]  }
  0x38   :  { %1055 = vmatpush3.bf16.msra.mxu0 %v1178_v0  ;;  %1162 = vmatpush3.bf16.msra.mxu1 %v1178_v0  ;;  %v1182_v5 = vld [vmem:[#allocation5 + $0x20] sm:$0xff]   ;;  %v1183_v6 = vld [vmem:[#allocation5 + $0x28] sm:$0xff]   ;;  %v1184_v7 = vld [vmem:[#allocation5 + $0x30] sm:$0xff]   ;;  %s945_s7 = sshll.u32 %s1327_s6, 4  ;;  %s946_s7 = int_to_ptr.vmem [resolvable:$true] %s945_s7 }
  0x39   :  { %1056 = vmatprep.subr.bf16.mxu0 %v1179_v1  ;;  %1155 = vmatprep.subr.bf16.mxu1 %v1179_v1  ;;  %v1185_v8 = vld [vmem:[#allocation5 + $0x38] sm:$0xff]   ;;  %v1204_v9 = vld [vmem:[#allocation2 + $0x90] sm:$0xff]   ;;  %v1187_v10 = vld [vmem:[#allocation2 + $0x8] sm:$0xff]   ;;  %s1292_s8 = scalar_lea.vmem %s946_s7, 32  ;;  %p1297_p11 = scmp.lt.s32.totalorder %s946_s7, %s946_s7 }
  0x3a   :  { %1070 = vmatprep.mubr.bf16.mxu0 %v1186_v4  ;;  %v1188_v11 = vld [vmem:[#allocation2 + $0x10] sm:$0xff]   ;;  %1106 = vmatprep.mubr.bf16.mxu1 %v1204_v9  ;;  %v1205_v12 = vld [vmem:[#allocation2 + $0x98] sm:$0xff]   ;;  %v1206_v13 = vld [vmem:[#allocation2 + $0xa0] sm:$0xff]   ;;  %p1293_p10 = scmp.ne.s32.totalorder %s946_s7, %s1292_s8  ;;  %p1298_p12 = scmp.lt.s32.totalorder %s1292_s8, %s1292_s8 }
  0x3b   :  { %v1189_v14 = vld [vmem:[#allocation2 + $0x18] sm:$0xff]   ;;  %v1190_v15 = vld [vmem:[#allocation2 + $0x20] sm:$0xff]   ;;  %v1207_v16 = vld [vmem:[#allocation2 + $0xa8] sm:$0xff]  }
  0x3c   :  { %1057 = vmatpush3.bf16.msra.mxu0 %v1179_v1  ;;  %1163 = vmatpush3.bf16.msra.mxu1 %v1179_v1  ;;  %v1208_v17 = vld [vmem:[#allocation2 + $0xb0] sm:$0xff]   ;;  %v1191_v18 = vld [vmem:[#allocation2 + $0x28] sm:$0xff]   ;;  %v1209_v19 = vld [vmem:[#allocation2 + $0xb8] sm:$0xff]   ;;  %p1299_p13 = por %p1298_p12, %p1297_p11 }
  0x3d   :  { %1058 = vmatprep.subr.bf16.mxu0 %v1180_v2  ;;  %1156 = vmatprep.subr.bf16.mxu1 %v1180_v2  ;;  %v1192_v20 = vld [vmem:[#allocation2 + $0x30] sm:$0xff]   ;;  %v1210_v21 = vld [vmem:[#allocation2 + $0xc0] sm:$0xff]   ;;  %v1193_v22 = vld [vmem:[#allocation2 + $0x38] sm:$0xff]  }
  0x3e   :  { %v1211_v23 = vld [vmem:[#allocation2 + $0xc8] sm:$0xff]   ;;  %v1194_v24 = vld [vmem:[#allocation2 + $0x40] sm:$0xff]   ;;  %v1212_v25 = vld [vmem:[#allocation2 + $0xd0] sm:$0xff]   ;;  %p1300_p0 = pnand %p1299_p13, %p1293_p10 }
  0x3f   :  { %v1195_v26 = vld [vmem:[#allocation2 + $0x48] sm:$0xff]   ;;  %v1213_v27 = vld [vmem:[#allocation2 + $0xd8] sm:$0xff]   ;;  %v1196_v28 = vld [vmem:[#allocation2 + $0x50] sm:$0xff]  }
  0x40   :  { %1059 = vmatpush3.bf16.msra.mxu0 %v1180_v2  ;;  %1164 = vmatpush3.bf16.msra.mxu1 %v1180_v2  ;;  %v1214_v29 = vld [vmem:[#allocation2 + $0xe0] sm:$0xff]   ;;  %v1197_v30 = vld [vmem:[#allocation2 + $0x58] sm:$0xff]   ;;  %v1215_v31 = vld [vmem:[#allocation2 + $0xe8] sm:$0xff]  }
  0x41   :  { %1060 = vmatprep.subr.bf16.mxu0 %v1181_v3  ;;  %1157 = vmatprep.subr.bf16.mxu1 %v1181_v3  ;;  %v1198_v32 = vld [vmem:[#allocation2 + $0x60] sm:$0xff]   ;;  %v1216_v33 = vld [vmem:[#allocation2 + $0xf0] sm:$0xff]   ;;  %v1199_v34 = vld [vmem:[#allocation2 + $0x68] sm:$0xff]  }
  0x42   :  { %v1217_v35 = vld [vmem:[#allocation2 + $0xf8] sm:$0xff]   ;;  %v1200_v36 = vld [vmem:[#allocation2 + $0x70] sm:$0xff]   ;;  %v1202_v38 = vld [vmem:[#allocation2 + $0x80] sm:$0xff]  }
  0x43   :  { %v1201_v37 = vld [vmem:[#allocation2 + $0x78] sm:$0xff]   ;;  %v1203_v39 = vld [vmem:[#allocation2 + $0x88] sm:$0xff]   ;;  %v1218_v40 = vld [vmem:[#allocation7] sm:$0xff]  }
  0x44   :  { %1061 = vmatpush3.bf16.msra.mxu0 %v1181_v3  ;;  %1165 = vmatpush3.bf16.msra.mxu1 %v1181_v3  ;;  %v1219_v42 = vld [vmem:[#allocation7 + $0x8] sm:$0xff]   ;;  %v1220_v43 = vld [vmem:[#allocation7 + $0x10] sm:$0xff]   ;;  %v1221_v44 = vld [vmem:[#allocation7 + $0x18] sm:$0xff]  }
  0x45   :  { %1062 = vmatprep.subr.bf16.mxu0 %v1182_v5  ;;  %1158 = vmatprep.subr.bf16.mxu1 %v1182_v5  ;;  %v1417_v45 = vld [vmem:[%s1593_s2] ss:$0 sm:$0xff] }
  0x46   :  { %v1222_v0 = vld [vmem:[#allocation7 + $0x20] sm:$0xff]  }
  0x48   :  { %1063 = vmatpush3.bf16.msra.mxu0 %v1182_v5  ;;  %1166 = vmatpush3.bf16.msra.mxu1 %v1182_v5 }
  0x49   :  { %1064 = vmatprep.subr.bf16.mxu0 %v1183_v6  ;;  %1159 = vmatprep.subr.bf16.mxu1 %v1183_v6 }
  0x4c   :  { %1065 = vmatpush3.bf16.msra.mxu0 %v1183_v6  ;;  %1167 = vmatpush3.bf16.msra.mxu1 %v1183_v6 }
  0x4d   :  { %1066 = vmatprep.subr.bf16.mxu0 %v1184_v7  ;;  %1160 = vmatprep.subr.bf16.mxu1 %v1184_v7 }
  0x50   :  { %1067 = vmatpush3.bf16.msra.mxu0 %v1184_v7  ;;  %1168 = vmatpush3.bf16.msra.mxu1 %v1184_v7 }
  0x51   :  { %1068 = vmatprep.subr.bf16.mxu0 %v1185_v8  ;;  %1161 = vmatprep.subr.bf16.mxu1 %v1185_v8 }
  0x54   :  { %1069 = vmatpush3.bf16.msra.mxu0 %v1185_v8  ;;  %1169 = vmatpush3.bf16.msra.mxu1 %v1185_v8 }
  0x55   :  { %1134 = vmatprep.subr.bf16.mxu1 %v1325_v41 }
  0x57   :  { %1071 = vmatmul.mubr.bf16.vlgmr.msra.gmra.mrb[0].mxu0 %v1187_v10  ;;  %1107 = vmatmul.mubr.bf16.vlgmr.msra.gmra.mrb[0].mxu1 %v1205_v12 }
  0x58   :  { %1074 = vmatprep.mubr.bf16.mxu0 %v1188_v11  ;;  %1110 = vmatprep.mubr.bf16.mxu1 %v1206_v13 }
  0x59   :  { %1135 = vmatpush3.bf16.msra.mxu1 %v1218_v40 }
  0x5a   :  { %1136 = vmatprep.subr.bf16.mxu1 %v1325_v41 }
  0x5d   :  { %1137 = vmatpush3.bf16.msra.mxu1 %v1219_v42 }
  0x5e   :  { %1138 = vmatprep.subr.bf16.mxu1 %v1325_v41 }
  0x5f   :  { %1075 = vmatmul.mubr.bf16.gmra.mrb[4].mxu0 %v1189_v14  ;;  %1111 = vmatmul.mubr.bf16.gmra.mrb[4].mxu1 %v1207_v16  ;;  %v1223_v14 = vld [vmem:[#allocation7 + $0x28] sm:$0xff]  }
  0x60   :  { %1078 = vmatprep.mubr.bf16.mxu0 %v1190_v15  ;;  %1114 = vmatprep.mubr.bf16.mxu1 %v1208_v17 }
  0x61   :  { %1139 = vmatpush3.bf16.msra.mxu1 %v1220_v43 }
  0x62   :  { %1140 = vmatprep.subr.bf16.mxu1 %v1325_v41 }
  0x65   :  { %1141 = vmatpush3.bf16.msra.mxu1 %v1221_v44 }
  0x66   :  { %1142 = vmatprep.subr.bf16.mxu1 %v1325_v41 }
  0x67   :  { %1079 = vmatmul.mubr.bf16.gmra.mrb[8].mxu0 %v1191_v18  ;;  %1115 = vmatmul.mubr.bf16.gmra.mrb[8].mxu1 %v1209_v19 }
  0x68   :  { %1082 = vmatprep.mubr.bf16.mxu0 %v1192_v20  ;;  %1118 = vmatprep.mubr.bf16.mxu1 %v1210_v21 }
  0x69   :  { %1143 = vmatpush3.bf16.msra.mxu1 %v1222_v0 }
  0x6a   :  { %1144 = vmatprep.subr.bf16.mxu1 %v1325_v41 }
  0x6d   :  { %1145 = vmatpush3.bf16.msra.mxu1 %v1223_v14 }
  0x6e   :  { %1146 = vmatprep.subr.bf16.mxu1 %v1325_v41 }
  0x6f   :  { %1083 = vmatmul.mubr.bf16.gmra.mrb[12].mxu0 %v1193_v22  ;;  %1119 = vmatmul.mubr.bf16.gmra.mrb[12].mxu1 %v1211_v23  ;;  %v1224_v22 = vld [vmem:[#allocation7 + $0x30] sm:$0xff]  }
  0x70   :  { %1086 = vmatprep.mubr.bf16.mxu0 %v1194_v24  ;;  %1122 = vmatprep.mubr.bf16.mxu1 %v1212_v25 }
  0x71   :  { %1147 = vmatpush3.bf16.msra.mxu1 %v1224_v22 }
  0x72   :  { %1148 = vmatprep.subr.bf16.mxu1 %v1325_v41 }
  0x77   :  { %1087 = vmatmul.mubr.bf16.gmra.mrb[16].mxu0 %v1195_v26  ;;  %1123 = vmatmul.mubr.bf16.gmra.mrb[16].mxu1 %v1213_v27 }
  0x78   :  { %1090 = vmatprep.mubr.bf16.mxu0 %v1196_v28  ;;  %1126 = vmatprep.mubr.bf16.mxu1 %v1214_v29 }
  0x7f   :  { %1091 = vmatmul.mubr.bf16.gmra.mrb[20].mxu0 %v1197_v30  ;;  %1127 = vmatmul.mubr.bf16.gmra.mrb[20].mxu1 %v1215_v31 }
  0x80   :  { %1094 = vmatprep.mubr.bf16.mxu0 %v1198_v32  ;;  %1130 = vmatprep.mubr.bf16.mxu1 %v1216_v33 }
  0x87   :  { %1095 = vmatmul.mubr.bf16.gmra.mrb[24].mxu0 %v1199_v34  ;;  %1131 = vmatmul.mubr.bf16.gmra.mrb[24].mxu1 %v1217_v35 }
  0x88   :  { %1098 = vmatprep.mubr.bf16.mxu0 %v1200_v36  ;;  %v1225_v36 = vld [vmem:[#allocation7 + $0x38] sm:$0xff]   ;;  %1150 = vmatprep.mubr.msk.bf16.mxu1 %vm1326_vm0, %v1325_v41 }
  0x89   :  { %1149 = vmatpush3.bf16.msra.mxu1 %v1225_v36 }
  0x8f   :  { %1099 = vmatmul.mubr.bf16.gmra.mrb[28].mxu0 %v1201_v37 }
  0x90   :  { %1102 = vmatprep.mubr.bf16.mxu0 %v1202_v38 }
  0x97   :  { %1103 = vmatmul.mubr.bf16.gmra.mrb[32].mxu0 %v1203_v39 }
 0x12a   :  { %v1072_v46 = vpop.f32.mrb[0].mxu0  ;;  %v1419_v47 = vpop.f32.mrb[0].mxu1 }
 0x12b   :  { %v424_v48 = vpop.f32.mrb[1].mxu0  ;;  %v1421_v49 = vpop.f32.mrb[1].mxu1  ;;  %v433_v55 = vadd.f32 %v1072_v46, %v1417_v45 }
 0x12c   :  { %v425_v50 = vadd.f32 %v1417_v45, %v424_v48  ;;  %v1073_v51 = vpop.f32.mrb[2].mxu0  ;;  %v1425_v52 = vpop.f32.mrb[2].mxu1 }
 0x12d   :  { %v427_v53 = vpop.f32.mrb[3].mxu0  ;;  %v1427_v54 = vpop.f32.mrb[3].mxu1  ;;  %v436_v58 = vadd.f32 %v1073_v51, %v1417_v45  ;;  %v681_v60 = vmax.f32 %v433_v55, 0.0 }
 0x12e   :  { %v428_v56 = vadd.f32 %v1417_v45, %v427_v53  ;;  %v679_v57 = vmax.f32 %v425_v50, 0.0 }
 0x12f   :  { %v682_v3 = vmax.f32 %v436_v58, 0.0 }
 0x130   :  { %v680_v59 = vmax.f32 %v428_v56, 0.0 }
 0x132   :  { %v743_v61 = vadd.f32 %v680_v59, %v679_v57  ;;  %v1076_v62 = vpop.f32.mrb[4].mxu0  ;;  %v1432_v63 = vpop.f32.mrb[4].mxu1 }
 0x133   :  { %v440_v1 = vpop.f32.mrb[5].mxu0  ;;  %v1434_v2 = vpop.f32.mrb[5].mxu1  ;;  %v449_v10 = vadd.f32 %v1076_v62, %v1417_v45 }
 0x134   :  { %v744_v4 = vadd.f32 %v743_v61, %v681_v60  ;;  %v441_v5 = vadd.f32 %v1417_v45, %v440_v1  ;;  %v1077_v6 = vpop.f32.mrb[6].mxu0  ;;  %v1437_v7 = vpop.f32.mrb[6].mxu1 }
 0x135   :  { %v443_v8 = vpop.f32.mrb[7].mxu0  ;;  %v1439_v9 = vpop.f32.mrb[7].mxu1  ;;  %v452_v16 = vadd.f32 %v1077_v6, %v1417_v45  ;;  %v685_v18 = vmax.f32 %v449_v10, 0.0 }
 0x136   :  { %v683_v11 = vmax.f32 %v441_v5, 0.0  ;;  %v745_v12 = vadd.f32 %v744_v4, %v682_v3  ;;  %v444_v13 = vadd.f32 %v1417_v45, %v443_v8 }
 0x137   :  { %v686_v25 = vmax.f32 %v452_v16, 0.0 }
 0x138   :  { %v746_v15 = vadd.f32 %v745_v12, %v683_v11  ;;  %v684_v17 = vmax.f32 %v444_v13, 0.0 }
 0x13a   :  { %v747_v19 = vadd.f32 %v746_v15, %v684_v17  ;;  %v1080_v20 = vpop.f32.mrb[8].mxu0  ;;  %v1446_v21 = vpop.f32.mrb[8].mxu1 }
 0x13b   :  { %v456_v23 = vpop.f32.mrb[9].mxu0  ;;  %v1448_v24 = vpop.f32.mrb[9].mxu1  ;;  %v465_v32 = vadd.f32 %v1080_v20, %v1417_v45 }
 0x13c   :  { %v748_v26 = vadd.f32 %v747_v19, %v685_v18  ;;  %v457_v27 = vadd.f32 %v1417_v45, %v456_v23  ;;  %v1081_v28 = vpop.f32.mrb[10].mxu0  ;;  %v1451_v29 = vpop.f32.mrb[10].mxu1 }
 0x13d   :  { %v459_v30 = vpop.f32.mrb[11].mxu0  ;;  %v1453_v31 = vpop.f32.mrb[11].mxu1  ;;  %v468_v38 = vadd.f32 %v1081_v28, %v1417_v45  ;;  %v689_v40 = vmax.f32 %v465_v32, 0.0 }
 0x13e   :  { %v687_v33 = vmax.f32 %v457_v27, 0.0  ;;  %v749_v34 = vadd.f32 %v748_v26, %v686_v25  ;;  %v460_v35 = vadd.f32 %v1417_v45, %v459_v30 }
 0x13f   :  { %v690_v50 = vmax.f32 %v468_v38, 0.0 }
 0x140   :  { %v750_v37 = vadd.f32 %v749_v34, %v687_v33  ;;  %v688_v39 = vmax.f32 %v460_v35, 0.0 }
 0x142   :  { %v751_v42 = vadd.f32 %v750_v37, %v688_v39  ;;  %v1084_v43 = vpop.f32.mrb[12].mxu0  ;;  %v1460_v44 = vpop.f32.mrb[12].mxu1 }
 0x143   :  { %v472_v46 = vpop.f32.mrb[13].mxu0  ;;  %v1462_v48 = vpop.f32.mrb[13].mxu1  ;;  %v481_v41 = vadd.f32 %v1084_v43, %v1417_v45 }
 0x144   :  { %v752_v51 = vadd.f32 %v751_v42, %v689_v40  ;;  %v473_v53 = vadd.f32 %v1417_v45, %v472_v46  ;;  %v1085_v55 = vpop.f32.mrb[14].mxu0  ;;  %v1465_v56 = vpop.f32.mrb[14].mxu1 }
 0x145   :  { %v475_v57 = vpop.f32.mrb[15].mxu0  ;;  %v1467_v58 = vpop.f32.mrb[15].mxu1  ;;  %v484_v0 = vadd.f32 %v1085_v55, %v1417_v45  ;;  %v693_v3 = vmax.f32 %v481_v41, 0.0 }
 0x146   :  { %v691_v59 = vmax.f32 %v473_v53, 0.0  ;;  %v753_v60 = vadd.f32 %v752_v51, %v690_v50  ;;  %v476_v61 = vadd.f32 %v1417_v45, %v475_v57 }
 0x147   :  { %v694_v11 = vmax.f32 %v484_v0, 0.0 }
 0x148   :  { %v754_v62 = vadd.f32 %v753_v60, %v691_v59  ;;  %v692_v1 = vmax.f32 %v476_v61, 0.0 }
 0x14a   :  { %v755_v4 = vadd.f32 %v754_v62, %v692_v1  ;;  %v1088_v5 = vpop.f32.mrb[16].mxu0  ;;  %v1472_v6 = vpop.f32.mrb[16].mxu1 }
 0x14b   :  { %v488_v8 = vpop.f32.mrb[17].mxu0  ;;  %v1474_v10 = vpop.f32.mrb[17].mxu1  ;;  %v497_v18 = vadd.f32 %v1088_v5, %v1417_v45 }
 0x14c   :  { %v756_v12 = vadd.f32 %v755_v4, %v693_v3  ;;  %v489_v13 = vadd.f32 %v1417_v45, %v488_v8  ;;  %v1089_v14 = vpop.f32.mrb[18].mxu0  ;;  %v1477_v15 = vpop.f32.mrb[18].mxu1 }
 0x14d   :  { %v491_v16 = vpop.f32.mrb[19].mxu0  ;;  %v1479_v17 = vpop.f32.mrb[19].mxu1  ;;  %v500_v25 = vadd.f32 %v1089_v14, %v1417_v45  ;;  %v697_v27 = vmax.f32 %v497_v18, 0.0 }
 0x14e   :  { %v695_v19 = vmax.f32 %v489_v13, 0.0  ;;  %v757_v20 = vadd.f32 %v756_v12, %v694_v11  ;;  %v492_v22 = vadd.f32 %v1417_v45, %v491_v16 }
 0x14f   :  { %v698_v35 = vmax.f32 %v500_v25, 0.0 }
 0x150   :  { %v758_v23 = vadd.f32 %v757_v20, %v695_v19  ;;  %v696_v26 = vmax.f32 %v492_v22, 0.0 }
 0x152   :  { %v759_v28 = vadd.f32 %v758_v23, %v696_v26  ;;  %v1092_v30 = vpop.f32.mrb[20].mxu0  ;;  %v1484_v32 = vpop.f32.mrb[20].mxu1 }
 0x153   :  { %v504_v33 = vpop.f32.mrb[21].mxu0  ;;  %v1486_v34 = vpop.f32.mrb[21].mxu1  ;;  %v513_v43 = vadd.f32 %v1092_v30, %v1417_v45 }
 0x154   :  { %v760_v36 = vadd.f32 %v759_v28, %v697_v27  ;;  %v505_v37 = vadd.f32 %v1417_v45, %v504_v33  ;;  %v1093_v38 = vpop.f32.mrb[22].mxu0  ;;  %v1489_v39 = vpop.f32.mrb[22].mxu1 }
 0x155   :  { %v507_v40 = vpop.f32.mrb[23].mxu0  ;;  %v1491_v42 = vpop.f32.mrb[23].mxu1  ;;  %v516_v55 = vadd.f32 %v1093_v38, %v1417_v45  ;;  %v701_v41 = vmax.f32 %v513_v43, 0.0 }
 0x156   :  { %v699_v46 = vmax.f32 %v505_v37, 0.0  ;;  %v761_v50 = vadd.f32 %v760_v36, %v698_v35  ;;  %v508_v51 = vadd.f32 %v1417_v45, %v507_v40 }
 0x157   :  { %v702_v1 = vmax.f32 %v516_v55, 0.0 }
 0x158   :  { %v762_v53 = vadd.f32 %v761_v50, %v699_v46  ;;  %v700_v57 = vmax.f32 %v508_v51, 0.0 }
 0x15a   :  { %v763_v59 = vadd.f32 %v762_v53, %v700_v57  ;;  %v1096_v60 = vpop.f32.mrb[24].mxu0  ;;  %v1496_v61 = vpop.f32.mrb[24].mxu1 }
 0x15b   :  { %v520_v62 = vpop.f32.mrb[25].mxu0  ;;  %v1498_v0 = vpop.f32.mrb[25].mxu1  ;;  %v529_v13 = vadd.f32 %v1096_v60, %v1417_v45 }
 0x15c   :  { %v764_v3 = vadd.f32 %v763_v59, %v701_v41  ;;  %v521_v4 = vadd.f32 %v1417_v45, %v520_v62  ;;  %v1097_v5 = vpop.f32.mrb[26].mxu0  ;;  %v1501_v8 = vpop.f32.mrb[26].mxu1 }
 0x15d   :  { %v523_v11 = vpop.f32.mrb[27].mxu0  ;;  %v1503_v12 = vpop.f32.mrb[27].mxu1  ;;  %v532_v20 = vadd.f32 %v1097_v5, %v1417_v45  ;;  %v705_v23 = vmax.f32 %v529_v13, 0.0 }
 0x15e   :  { %v703_v14 = vmax.f32 %v521_v4, 0.0  ;;  %v765_v16 = vadd.f32 %v764_v3, %v702_v1  ;;  %v524_v18 = vadd.f32 %v1417_v45, %v523_v11 }
 0x15f   :  { %v706_v28 = vmax.f32 %v532_v20, 0.0 }
 0x160   :  { %v766_v19 = vadd.f32 %v765_v16, %v703_v14  ;;  %v704_v22 = vmax.f32 %v524_v18, 0.0  ;;  %v569_v18 = vadd.f32 %v1417_v45, %v1421_v49  ;;  %v585_v49 = vadd.f32 %v1417_v45, %v1434_v2 }
 0x161   :  { %v601_v2 = vadd.f32 %v1417_v45, %v1448_v24  ;;  %v617_v24 = vadd.f32 %v1417_v45, %v1462_v48  ;;  %v633_v48 = vadd.f32 %v1417_v45, %v1474_v10  ;;  %v649_v10 = vadd.f32 %v1417_v45, %v1486_v34 }
 0x162   :  { %v767_v25 = vadd.f32 %v766_v19, %v704_v22  ;;  %v1100_v26 = vpop.f32.mrb[28].mxu0  ;;  %v665_v34 = vadd.f32 %v1417_v45, %v1498_v0  ;;  %v676_v0 = vadd.f32 %v1501_v8, %v1417_v45 }
 0x163   :  { %v536_v27 = vpop.f32.mrb[29].mxu0  ;;  %v545_v37 = vadd.f32 %v1100_v26, %v1417_v45  ;;  %v572_v26 = vadd.f32 %v1417_v45, %v1427_v54  ;;  %v588_v54 = vadd.f32 %v1417_v45, %v1439_v9  ;;  %v604_v9 = vadd.f32 %v1417_v45, %v1453_v31 }
 0x164   :  { %v768_v30 = vadd.f32 %v767_v25, %v705_v23  ;;  %v537_v33 = vadd.f32 %v1417_v45, %v536_v27  ;;  %v1101_v35 = vpop.f32.mrb[30].mxu0  ;;  %v715_v25 = vmax.f32 %v569_v18, 0.0  ;;  %v577_v27 = vadd.f32 %v1419_v47, %v1417_v45 }
 0x165   :  { %v539_v36 = vpop.f32.mrb[31].mxu0  ;;  %v548_v50 = vadd.f32 %v1101_v35, %v1417_v45  ;;  %v709_v53 = vmax.f32 %v545_v37, 0.0  ;;  %v716_v35 = vmax.f32 %v572_v26, 0.0  ;;  %v593_v47 = vadd.f32 %v1432_v63, %v1417_v45 }
 0x166   :  { %v707_v38 = vmax.f32 %v537_v33, 0.0  ;;  %v769_v40 = vadd.f32 %v768_v30, %v706_v28  ;;  %v540_v43 = vadd.f32 %v1417_v45, %v539_v36  ;;  %v580_v33 = vadd.f32 %v1425_v52, %v1417_v45 }
 0x167   :  { %v710_v59 = vmax.f32 %v548_v50, 0.0  ;;  %v717_v36 = vmax.f32 %v577_v27, 0.0  ;;  %v596_v52 = vadd.f32 %v1437_v7, %v1417_v45  ;;  %v609_v63 = vadd.f32 %v1446_v21, %v1417_v45 }
 0x168   :  { %v770_v46 = vadd.f32 %v769_v40, %v707_v38  ;;  %v708_v51 = vmax.f32 %v540_v43, 0.0  ;;  %v718_v38 = vmax.f32 %v580_v33, 0.0  ;;  %v719_v43 = vmax.f32 %v585_v49, 0.0 }
 0x169   :  { %v612_v7 = vadd.f32 %v1451_v29, %v1417_v45  ;;  %v620_v31 = vadd.f32 %v1417_v45, %v1467_v58  ;;  %v625_v21 = vadd.f32 %v1460_v44, %v1417_v45  ;;  %v628_v29 = vadd.f32 %v1465_v56, %v1417_v45 }
 0x16a   :  { %v771_v55 = vadd.f32 %v770_v46, %v708_v51  ;;  %v1104_v57 = vpop.f32.mrb[32].mxu0  ;;  %v720_v51 = vmax.f32 %v588_v54, 0.0  ;;  %v731_v26 = vmax.f32 %v633_v48, 0.0  ;;  %v636_v58 = vadd.f32 %v1417_v45, %v1479_v17 }
 0x16b   :  { %v552_v41 = vpop.f32.mrb[33].mxu0  ;;  %v561_v5 = vadd.f32 %v1104_v57, %v1417_v45  ;;  %v722_v57 = vmax.f32 %v596_v52, 0.0  ;;  %v641_v44 = vadd.f32 %v1472_v6, %v1417_v45  ;;  %v644_v56 = vadd.f32 %v1477_v15, %v1417_v45 }
 0x16c   :  { %v772_v60 = vadd.f32 %v771_v55, %v709_v53  ;;  %v553_v62 = vadd.f32 %v1417_v45, %v552_v41  ;;  %v1105_v1 = vpop.f32.mrb[34].mxu0  ;;  %v721_v53 = vmax.f32 %v593_v47, 0.0  ;;  %v652_v17 = vadd.f32 %v1417_v45, %v1491_v42 }
 0x16d   :  { %v555_v3 = vpop.f32.mrb[35].mxu0  ;;  %v564_v14 = vadd.f32 %v1105_v1, %v1417_v45  ;;  %v713_v19 = vmax.f32 %v561_v5, 0.0  ;;  %v724_v1 = vmax.f32 %v604_v9, 0.0  ;;  %v733_v33 = vmax.f32 %v641_v44, 0.0 }
 0x16e   :  { %v1513_v4 = vadd.f32 %v772_v60, %v710_v59  ;;  %v556_v11 = vadd.f32 %v1417_v45, %v555_v3  ;;  %v711_v13 = vmax.f32 %v553_v62, 0.0  ;;  %v723_v59 = vmax.f32 %v601_v2, 0.0 }
 0x16f   :  { %v714_v22 = vmax.f32 %v564_v14, 0.0  ;;  %v725_v3 = vmax.f32 %v609_v63, 0.0  ;;  %v727_v14 = vmax.f32 %v617_v24, 0.0  ;;  %v734_v49 = vmax.f32 %v644_v56, 0.0 }
 0x170   :  { %v712_v16 = vmax.f32 %v556_v11, 0.0  ;;  %v726_v11 = vmax.f32 %v612_v7, 0.0  ;;  %v657_v6 = vadd.f32 %v1484_v32, %v1417_v45  ;;  %v660_v15 = vadd.f32 %v1489_v39, %v1417_v45 }
 0x171   :  { %v774_v54 = vrot.slane %v1513_v4, 4  ;;  %v668_v42 = vadd.f32 %v1417_v45, %v1503_v12  ;;  %v673_v2 = vadd.f32 %v1496_v61, %v1417_v45  ;;  %v742_v9 = vmax.f32 %v676_v0, 0.0 }
 0x172   :  { %v780_v20 = vadd.f32 %v712_v16, %v711_v13  ;;  %v737_v47 = vmax.f32 %v657_v6, 0.0 }
 0x173   :  { %v775_v32 = vadd.f32 %v774_v54, %v1513_v4 }
 0x174   :  { %v781_v23 = vadd.f32 %v780_v20, %v713_v19  ;;  %v728_v19 = vmax.f32 %v620_v31, 0.0  ;;  %v729_v20 = vmax.f32 %v625_v21, 0.0  ;;  %v996_v21 = vld [vmem:[%s1595_s4] ss:$0 sm:$0xff] }
 0x176   :  { %v782_v28 = vadd.f32 %v781_v23, %v714_v22  ;;  %v730_v23 = vmax.f32 %v628_v29, 0.0 }
 0x178   :  { %v783_v30 = vadd.f32 %v782_v28, %v715_v25 }
 0x17a   :  { %v784_v37 = vadd.f32 %v783_v30, %v716_v35  ;;  %v732_v30 = vmax.f32 %v636_v58, 0.0 }
 0x17c   :  { %v785_v40 = vadd.f32 %v784_v37, %v717_v36  ;;  %v735_v37 = vmax.f32 %v649_v10, 0.0 }
 0x17e   :  { %v786_v46 = vadd.f32 %v785_v40, %v718_v38 }
 0x180   :  { %v787_v50 = vadd.f32 %v786_v46, %v719_v43  ;;  %v736_v43 = vmax.f32 %v652_v17, 0.0 }
 0x182   :  { %v788_v55 = vadd.f32 %v787_v50, %v720_v51  ;;  %v738_v50 = vmax.f32 %v660_v15, 0.0  ;;  %v739_v51 = vmax.f32 %v665_v34, 0.0 }
 0x184   :  { %v789_v41 = vadd.f32 %v788_v55, %v721_v53  ;;  %v740_v55 = vmax.f32 %v668_v42, 0.0 }
 0x186   :  { %v790_v60 = vadd.f32 %v789_v41, %v722_v57  ;;  %v776_v57 = vrot.slane %v775_v32, 2  ;;  %v741_v41 = vmax.f32 %v673_v2, 0.0 }
 0x188   :  { %v791_v62 = vadd.f32 %v790_v60, %v723_v59  ;;  %v777_v60 = vadd.f32 %v776_v57, %v775_v32 }
 0x18a   :  { %v792_v5 = vadd.f32 %v791_v62, %v724_v1  ;;  %v778_v12 = vrot.slane %v777_v60, 1 }
 0x18c   :  { %v793_v13 = vadd.f32 %v792_v5, %v725_v3  ;;  %v779_v24 = vadd.f32 %v778_v12, %v777_v60 }
 0x18e   :  { %v794_v16 = vadd.f32 %v793_v13, %v726_v11  ;;  %v817_v5 = vpack.c.bf16 %v779_v24, %v779_v24 }
 0x190   :  { %v795_v18 = vadd.f32 %v794_v16, %v727_v14  ;;  %v844_v45 = vunpack.c.l.b16 %v817_v5 }
 0x192   :  { %v796_v22 = vadd.f32 %v795_v18, %v728_v19 }
 0x194   :  { %v797_v25 = vadd.f32 %v796_v22, %v729_v20 }
 0x196   :  { %v798_v27 = vadd.f32 %v797_v25, %v730_v23 }
 0x198   :  { %v799_v28 = vadd.f32 %v798_v27, %v731_v26 }
 0x19a   :  { %v800_v35 = vadd.f32 %v799_v28, %v732_v30 }
 0x19c   :  { %v801_v36 = vadd.f32 %v800_v35, %v733_v33 }
 0x19e   :  { %v802_v38 = vadd.f32 %v801_v36, %v734_v49 }
 0x1a0   :  { %v803_v40 = vadd.f32 %v802_v38, %v735_v37 }
 0x1a2   :  { %v804_v46 = vadd.f32 %v803_v40, %v736_v43 }
 0x1a4   :  { %v805_v52 = vadd.f32 %v804_v46, %v737_v47 }
 0x1a6   :  { %v806_v39 = vadd.f32 %v805_v52, %v738_v50 }
 0x1a8   :  { %v807_v53 = vadd.f32 %v806_v39, %v739_v51 }
 0x1aa   :  { %v808_v59 = vadd.f32 %v807_v53, %v740_v55 }
 0x1ac   :  { %v809_v63 = vadd.f32 %v808_v59, %v741_v41 }
 0x1ae   :  { %v810_v62 = vadd.f32 %v809_v63, %v742_v9 }
 0x1b0   :  { %v811_v7 = vrot.slane %v810_v62, 4 }
 0x1b2   :  { %v812_v1 = vadd.f32 %v811_v7, %v810_v62 }
 0x1b4   :  { %v813_v4 = vrot.slane %v812_v1, 2 }
 0x1b6   :  { %v814_v3 = vadd.f32 %v813_v4, %v812_v1 }
 0x1b8   :  { %v815_v61 = vrot.slane %v814_v3, 1 }
 0x1ba   :  { %v816_v11 = vadd.f32 %v815_v61, %v814_v3 }
 0x1bc   :  { %v818_v13 = vpack.c.bf16 %v816_v11, %v816_v11 }
 0x1be   :  { %v845_v8 = vunpack.c.l.b16 %v818_v13 }
 0x1c0   :  { %v847_v14 = vsel %vm846_vm1, %v845_v8, %v844_v45 }
 0x1c1   :  { %v848_v31 = vpack.c.b16 %v847_v14, %v847_v14 }
 0x1c3   :  { %1151 = vmatmul.mubr.bf16.vlgmr.msra.gmra.mrb[28].mxu1 %v848_v31 }
 0x296   :  { %v932_v16 = vpop.f32.mrb[28].mxu1 }
 0x297   :  { %v933_v18 = vadd.f32 %v996_v21, %v932_v16  ;;  %v1152_v29 = vpop.f32.mrb[29].mxu1 }
 0x298   :  { %v935_v19 = vpop.f32.mrb[30].mxu1 }
 0x299   :  { %938 = vst [vmem:[#allocation8] sm:$0x3] %v933_v18  ;;  %v1153_v48 = vpop.f32.mrb[31].mxu1 }
 0x29a   :  { %1303 = shalt.err (!%p1300_p0)
}
 0x29b   :  { %s1304_s4 = scalar_lea.hbm %s1596_s5, 32 }
 0x29c   :  { %p1305_p1 = scmp.ne.s32.totalorder %s1596_s5, %s1304_s4  ;;  %p1308_p2 = scmp.lt.u32.totalorder %s1304_s4, %s1596_s5 }
 0x29e   :  { %p1310_p3 = pnand %p1308_p2, %p1305_p1 }
 0x2a0   :  { %1313 = shalt.err (!%p1310_p3)
}
 0x2a1   :  { %948 = dma.vmem_to_hbm [thread:$0]  %s946_s7, 32, %s1596_s5, [#allocation4]  }
 0x2a2   :  { %1318 = dma.done.wait [#allocation4], 32  }
 0x2a3   :  { %1319 = vsyncadd [#allocation4], 4294967264 }
 0x2a4   :  { %952 = vsyncpa [#allocation3], 1 }
 0x2a5   :  { %953 = vsyncpa [#allocation6], 1 }
 0x2a6   :  { %954 = vsyncpa [#allocation4], 1 }

</bundles_post_ra>
